<compile_context>
chip_gen: v5e
topology: v5e:2x2
jax: 0.10.0
libtpu: 0.0.40
codegen_flags: <defaults>
</compile_context>

<pallas_src>
import functools
import math

import jax
import jax.numpy as jnp
from jax.experimental import pallas as pl
from jax.experimental.pallas import tpu as pltpu


def _cdiv(a, b):
    return -(-a // b)


def _pick_tiling(packed_rows, bytes_per_row):
    """Return (tile_rows, padded_packed_rows).

    tile_rows is a multiple of 8 or equals the (possibly padded) full extent.
    Prefers exact tiling (no pad, no slice); bounds padding waste otherwise."""
    P = packed_rows
    # Tiny problems: one full-extent block.  Per-step overhead (~0.35 us)
    # dominates any pipelining / megacore benefit below ~0.5 MiB.
    if P <= 8 or P * bytes_per_row <= (512 << 10):
        return P, P
    # Cap block rows at ~1 MiB of input and keep >= 4 grid steps so v7x's two
    # TensorCores both get work and DMA overlaps compute on all chips.
    cap = max(8, min((1 << 20) // bytes_per_row, P // 4) // 8 * 8)
    # 1) Largest multiple-of-8 exact divisor of P -> zero padding, zero slicing.
    exact = next((t for t in range(cap, 7, -8) if P % t == 0), 0)
    if exact >= 256:                      # >=128 KiB blocks: near HBM roofline
        return exact, P
    # 2) Exact tiling would force small blocks; allow a padded tail (bounded to
    #    <= max(8, ~1.6% of P) rows) only if it buys substantially bigger tiles
    #    — padding costs one pad pass + one slice pass over the whole tensor.
    max_waste = max(8, P // 64)
    padded_t = next((t for t in range(cap, 7, -8) if (-P) % t <= max_waste), 8)
    if exact >= padded_t // 4:
        return exact, P
    return padded_t, P + ((-P) % padded_t)


def _seg_sum(v, lane, feat, lane_w):
    """Sum over contiguous feat-wide lane segments, broadcast back to every lane
    of its segment.  feat is a power of two (any divisor of 128 is).

    log2(feat) butterfly steps; per step the partner lane is i XOR s.  The
    rolls run on the XLU, the select/add on the VPU — the MXU stays idle and
    there is no fp32 multi-pass matmul (the v5e concern)."""
    s = feat // 2
    while s >= 1:
        partner = lane ^ s                                  # butterfly partner
        fwd_v = pltpu.roll(v, shift=s, axis=1)
        bwd_v = pltpu.roll(v, shift=lane_w - s, axis=1)
        fwd_lane = pltpu.roll(lane, shift=s, axis=1)        # tiny (1, L) roll
        take_fwd = fwd_lane == partner                      # direction-agnostic
        v = v + jnp.where(take_fwd, fwd_v, bwd_v)
        s //= 2
    return v


def _ln_packed_kernel(x_ref, g_ref, b_ref, o_ref, *, feat, eps):
    # x_ref: (T, L) with L = pack*feat = 128 lanes; each feat-wide lane segment
    # is one logical LayerNorm row, so every load/store is 128-lane dense.
    x = x_ref[...].astype(jnp.float32)
    lane_w = x.shape[-1]
    lane = jax.lax.broadcasted_iota(jnp.int32, (1, lane_w), 1)
    mean = _seg_sum(x, lane, feat, lane_w) * jnp.float32(1.0 / feat)
    diff = x - mean
    var = _seg_sum(diff * diff, lane, feat, lane_w) * jnp.float32(1.0 / (feat - 1))
    # eps is added to std (not var) — matches the torch module exactly.
    # approx=True reciprocal (~2^-12 rel. err) would fail 1e-5; keep exact.
    inv = pl.reciprocal(jnp.sqrt(var) + jnp.float32(eps), approx=False)
    o_ref[...] = (g_ref[...] * diff * inv + b_ref[...]).astype(o_ref.dtype)


def _ln_plain_kernel(x_ref, g_ref, b_ref, o_ref, *, feat, eps):
    # Fallback when feat is not a divisor of 128 (or feat >= 128): reduce along
    # lanes directly.
    # TODO(synk): feat that is not a multiple of 128 still produces masked
    # partial-lane stores; extend the lane-packing trick with a lane mask.
    x = x_ref[...].astype(jnp.float32)
    mean = jnp.mean(x, axis=-1, keepdims=True)
    diff = x - mean
    var = jnp.sum(diff * diff, axis=-1, keepdims=True) * jnp.float32(1.0 / (feat - 1))
    inv = pl.reciprocal(jnp.sqrt(var) + jnp.float32(eps), approx=False)
    o_ref[...] = (g_ref[...] * diff * inv + b_ref[...]).astype(o_ref.dtype)


def layer_norm(x, a_2, b_2, eps=1e-6):
    """x: (..., features). a_2, b_2: (features,). Returns same shape/dtype as x."""
    orig_shape = x.shape
    feat = orig_shape[-1]
    assert feat > 1, "unbiased std needs >= 2 features (torch returns NaN for 1)"
    rows = int(math.prod(orig_shape[:-1])) if len(orig_shape) > 1 else 1

    # Lane packing: when feat divides 128, pack 128//feat logical rows into one
    # 128-lane physical row so all loads/stores are lane dense (no vst.msk).
    pack = 128 // feat if (feat < 128 and 128 % feat == 0) else 1
    lane_w = feat * pack
    bytes_per_row = lane_w * 4                          # sized for f32 compute

    packed_rows = _cdiv(rows, pack)
    tile_rows, padded_packed = _pick_tiling(packed_rows, bytes_per_row)

    total_rows = padded_packed * pack
    x2 = x.reshape(rows, feat)
    if total_rows != rows:
        # Rare path (awkward shapes only): zero padding is numerically safe —
        # padded rows give diff = 0, std = 0 -> output = b_2 — and is sliced
        # off below.  _pick_tiling avoids this whenever exact tiling exists.
        x2 = jnp.pad(x2, ((0, total_rows - rows), (0, 0)))
    xp = x2.reshape(padded_packed, lane_w)

    gamma = jnp.tile(a_2.astype(jnp.float32), pack).reshape(1, lane_w)
    beta = jnp.tile(b_2.astype(jnp.float32), pack).reshape(1, lane_w)

    grid = (padded_packed // tile_rows,)
    x_spec = pl.BlockSpec((tile_rows, lane_w), lambda i: (i, 0))
    p_spec = pl.BlockSpec((1, lane_w), lambda i: (0, 0))   # VMEM-resident params
    o_spec = pl.BlockSpec((tile_rows, lane_w), lambda i: (i, 0))

    kern = _ln_packed_kernel if pack > 1 else _ln_plain_kernel
    n_elem = padded_packed * lane_w
    butterfly_steps = (feat - 1).bit_length() if pack > 1 else 0
    cost = pl.CostEstimate(
        flops=int(n_elem * (10 + 4 * butterfly_steps)),
        transcendentals=int(2 * n_elem),     # sqrt + reciprocal run on all lanes
        bytes_accessed=int(2 * n_elem * x.dtype.itemsize + 2 * lane_w * 4),
    )
    cparams = pltpu.CompilerParams(
        dimension_semantics=("parallel",),
        # <=1 MiB blocks double-buffered in+out plus f32 temporaries stay well
        # below this; 32 MiB also leaves headroom under v7x's 64 MiB physical.
        vmem_limit_bytes=32 << 20,
    )

    out = pl.pallas_call(
        functools.partial(kern, feat=feat, eps=eps),
        out_shape=jax.ShapeDtypeStruct((padded_packed, lane_w), x.dtype),
        grid_spec=pltpu.PrefetchScalarGridSpec(
            num_scalar_prefetch=0,
            grid=grid,
            in_specs=[x_spec, p_spec, p_spec],
            out_specs=o_spec,
        ),
        compiler_params=cparams,
        cost_estimate=cost,
    )(xp, gamma, beta)

    out = out.reshape(total_rows, feat)
    if total_rows != rows:
        out = out[:rows]
    return out.reshape(orig_shape)


if __name__ == "__main__":
    # module: LayerNorm(features=32)
    batch, seq, features = 2, 8, 32
    key = jax.random.PRNGKey(0)
    x = jax.random.normal(key, (batch, seq, features), dtype=jnp.float32)

    # deterministic parameter init exactly as in __init__
    a_2 = jnp.ones((features,), dtype=jnp.float32)   # torch.ones(features)
    b_2 = jnp.zeros((features,), dtype=jnp.float32)  # torch.zeros(features)
    eps = 1e-6

    out = layer_norm(x, a_2, b_2, eps)
    jax.block_until_ready(out)

    # reference check in plain JAX (same semantics as the torch module)
    mean = jnp.mean(x, axis=-1, keepdims=True)
    std = jnp.sqrt(jnp.sum((x - mean) ** 2, axis=-1, keepdims=True)
                   / (features - 1))
    ref = a_2 * (x - mean) / (std + eps) + b_2
    assert jnp.allclose(out, ref, atol=1e-5, rtol=1e-5), "mismatch vs reference"

    print("KERNEL_OK")
</pallas_src>

<mosaic_0001>
module attributes {stable_mosaic.version = 11 : i64} {
  func.func @_ln_packed_kernel(%arg0: i32, %arg1: memref<4x128xf32, #tpu.memory_space<vmem>>, %arg2: memref<1x128xf32, #tpu.memory_space<vmem>>, %arg3: memref<1x128xf32, #tpu.memory_space<vmem>>, %arg4: memref<4x128xf32, #tpu.memory_space<vmem>>) attributes {dimension_semantics = [#tpu.dimension_semantics<parallel>], iteration_bounds = array<i64: 1>, scalar_prefetch = 0 : i64, scratch_operands = 0 : i64, tpu.core_type = #tpu.core_type<tc>, window_params = [{transform_indices = @transform_0, window_bounds = array<i64: 4, 128>}, {pipeline_mode = #tpu.pipeline_mode<synchronous>, transform_indices = @transform_1, window_bounds = array<i64: 1, 128>}, {pipeline_mode = #tpu.pipeline_mode<synchronous>, transform_indices = @transform_2, window_bounds = array<i64: 1, 128>}, {transform_indices = @transform_3, window_bounds = array<i64: 4, 128>}]} {
    %c0 = arith.constant 0 : index
    %c0_0 = arith.constant 0 : index
    %0 = vector.load %arg1[%c0, %c0_0] : memref<4x128xf32, #tpu.memory_space<vmem>>, vector<4x128xf32>
    %1 = tpu.iota {dimensions = array<i32: 1>} : vector<1x128xi32>
    %c16_i32 = arith.constant 16 : i32
    %2 = vector.broadcast %c16_i32 : i32 to vector<1x128xi32>
    %3 = arith.xori %1, %2 : vector<1x128xi32>
    %c16_i32_1 = arith.constant 16 : i32
    %4 = tpu.dynamic_rotate %0 by %c16_i32_1 dim 1 : vector<4x128xf32>, i32 -> vector<4x128xf32>
    %c112_i32 = arith.constant 112 : i32
    %5 = tpu.dynamic_rotate %0 by %c112_i32 dim 1 : vector<4x128xf32>, i32 -> vector<4x128xf32>
    %c16_i32_2 = arith.constant 16 : i32
    %6 = tpu.dynamic_rotate %1 by %c16_i32_2 dim 1 : vector<1x128xi32>, i32 -> vector<1x128xi32>
    %7 = arith.cmpi eq, %6, %3 : vector<1x128xi32>
    %8 = vector.shape_cast %7 : vector<1x128xi1> to vector<1x128xi1>
    %9 = vector.broadcast %8 : vector<1x128xi1> to vector<4x128xi1>
    %10 = arith.select %9, %4, %5 : vector<4x128xi1>, vector<4x128xf32>
    %11 = arith.addf %0, %10 : vector<4x128xf32>
    %c8_i32 = arith.constant 8 : i32
    %12 = vector.broadcast %c8_i32 : i32 to vector<1x128xi32>
    %13 = arith.xori %1, %12 : vector<1x128xi32>
    %c8_i32_3 = arith.constant 8 : i32
    %14 = tpu.dynamic_rotate %11 by %c8_i32_3 dim 1 : vector<4x128xf32>, i32 -> vector<4x128xf32>
    %c120_i32 = arith.constant 120 : i32
    %15 = tpu.dynamic_rotate %11 by %c120_i32 dim 1 : vector<4x128xf32>, i32 -> vector<4x128xf32>
    %c8_i32_4 = arith.constant 8 : i32
    %16 = tpu.dynamic_rotate %1 by %c8_i32_4 dim 1 : vector<1x128xi32>, i32 -> vector<1x128xi32>
    %17 = arith.cmpi eq, %16, %13 : vector<1x128xi32>
    %18 = vector.shape_cast %17 : vector<1x128xi1> to vector<1x128xi1>
    %19 = vector.broadcast %18 : vector<1x128xi1> to vector<4x128xi1>
    %20 = arith.select %19, %14, %15 : vector<4x128xi1>, vector<4x128xf32>
    %21 = arith.addf %11, %20 : vector<4x128xf32>
    %c4_i32 = arith.constant 4 : i32
    %22 = vector.broadcast %c4_i32 : i32 to vector<1x128xi32>
    %23 = arith.xori %1, %22 : vector<1x128xi32>
    %c4_i32_5 = arith.constant 4 : i32
    %24 = tpu.dynamic_rotate %21 by %c4_i32_5 dim 1 : vector<4x128xf32>, i32 -> vector<4x128xf32>
    %c124_i32 = arith.constant 124 : i32
    %25 = tpu.dynamic_rotate %21 by %c124_i32 dim 1 : vector<4x128xf32>, i32 -> vector<4x128xf32>
    %c4_i32_6 = arith.constant 4 : i32
    %26 = tpu.dynamic_rotate %1 by %c4_i32_6 dim 1 : vector<1x128xi32>, i32 -> vector<1x128xi32>
    %27 = arith.cmpi eq, %26, %23 : vector<1x128xi32>
    %28 = vector.shape_cast %27 : vector<1x128xi1> to vector<1x128xi1>
    %29 = vector.broadcast %28 : vector<1x128xi1> to vector<4x128xi1>
    %30 = arith.select %29, %24, %25 : vector<4x128xi1>, vector<4x128xf32>
    %31 = arith.addf %21, %30 : vector<4x128xf32>
    %c2_i32 = arith.constant 2 : i32
    %32 = vector.broadcast %c2_i32 : i32 to vector<1x128xi32>
    %33 = arith.xori %1, %32 : vector<1x128xi32>
    %c2_i32_7 = arith.constant 2 : i32
    %34 = tpu.dynamic_rotate %31 by %c2_i32_7 dim 1 : vector<4x128xf32>, i32 -> vector<4x128xf32>
    %c126_i32 = arith.constant 126 : i32
    %35 = tpu.dynamic_rotate %31 by %c126_i32 dim 1 : vector<4x128xf32>, i32 -> vector<4x128xf32>
    %c2_i32_8 = arith.constant 2 : i32
    %36 = tpu.dynamic_rotate %1 by %c2_i32_8 dim 1 : vector<1x128xi32>, i32 -> vector<1x128xi32>
    %37 = arith.cmpi eq, %36, %33 : vector<1x128xi32>
    %38 = vector.shape_cast %37 : vector<1x128xi1> to vector<1x128xi1>
    %39 = vector.broadcast %38 : vector<1x128xi1> to vector<4x128xi1>
    %40 = arith.select %39, %34, %35 : vector<4x128xi1>, vector<4x128xf32>
    %41 = arith.addf %31, %40 : vector<4x128xf32>
    %c1_i32 = arith.constant 1 : i32
    %42 = vector.broadcast %c1_i32 : i32 to vector<1x128xi32>
    %43 = arith.xori %1, %42 : vector<1x128xi32>
    %c1_i32_9 = arith.constant 1 : i32
    %44 = tpu.dynamic_rotate %41 by %c1_i32_9 dim 1 : vector<4x128xf32>, i32 -> vector<4x128xf32>
    %c127_i32 = arith.constant 127 : i32
    %45 = tpu.dynamic_rotate %41 by %c127_i32 dim 1 : vector<4x128xf32>, i32 -> vector<4x128xf32>
    %c1_i32_10 = arith.constant 1 : i32
    %46 = tpu.dynamic_rotate %1 by %c1_i32_10 dim 1 : vector<1x128xi32>, i32 -> vector<1x128xi32>
    %47 = arith.cmpi eq, %46, %43 : vector<1x128xi32>
    %48 = vector.shape_cast %47 : vector<1x128xi1> to vector<1x128xi1>
    %49 = vector.broadcast %48 : vector<1x128xi1> to vector<4x128xi1>
    %50 = arith.select %49, %44, %45 : vector<4x128xi1>, vector<4x128xf32>
    %51 = arith.addf %41, %50 : vector<4x128xf32>
    %cst = arith.constant 3.125000e-02 : f32
    %52 = vector.broadcast %cst : f32 to vector<4x128xf32>
    %53 = arith.mulf %51, %52 : vector<4x128xf32>
    %54 = arith.subf %0, %53 : vector<4x128xf32>
    %55 = arith.mulf %54, %54 : vector<4x128xf32>
    %c16_i32_11 = arith.constant 16 : i32
    %56 = vector.broadcast %c16_i32_11 : i32 to vector<1x128xi32>
    %57 = arith.xori %1, %56 : vector<1x128xi32>
    %c16_i32_12 = arith.constant 16 : i32
    %58 = tpu.dynamic_rotate %55 by %c16_i32_12 dim 1 : vector<4x128xf32>, i32 -> vector<4x128xf32>
    %c112_i32_13 = arith.constant 112 : i32
    %59 = tpu.dynamic_rotate %55 by %c112_i32_13 dim 1 : vector<4x128xf32>, i32 -> vector<4x128xf32>
    %c16_i32_14 = arith.constant 16 : i32
    %60 = tpu.dynamic_rotate %1 by %c16_i32_14 dim 1 : vector<1x128xi32>, i32 -> vector<1x128xi32>
    %61 = arith.cmpi eq, %60, %57 : vector<1x128xi32>
    %62 = vector.shape_cast %61 : vector<1x128xi1> to vector<1x128xi1>
    %63 = vector.broadcast %62 : vector<1x128xi1> to vector<4x128xi1>
    %64 = arith.select %63, %58, %59 : vector<4x128xi1>, vector<4x128xf32>
    %65 = arith.addf %55, %64 : vector<4x128xf32>
    %c8_i32_15 = arith.constant 8 : i32
    %66 = vector.broadcast %c8_i32_15 : i32 to vector<1x128xi32>
    %67 = arith.xori %1, %66 : vector<1x128xi32>
    %c8_i32_16 = arith.constant 8 : i32
    %68 = tpu.dynamic_rotate %65 by %c8_i32_16 dim 1 : vector<4x128xf32>, i32 -> vector<4x128xf32>
    %c120_i32_17 = arith.constant 120 : i32
    %69 = tpu.dynamic_rotate %65 by %c120_i32_17 dim 1 : vector<4x128xf32>, i32 -> vector<4x128xf32>
    %c8_i32_18 = arith.constant 8 : i32
    %70 = tpu.dynamic_rotate %1 by %c8_i32_18 dim 1 : vector<1x128xi32>, i32 -> vector<1x128xi32>
    %71 = arith.cmpi eq, %70, %67 : vector<1x128xi32>
    %72 = vector.shape_cast %71 : vector<1x128xi1> to vector<1x128xi1>
    %73 = vector.broadcast %72 : vector<1x128xi1> to vector<4x128xi1>
    %74 = arith.select %73, %68, %69 : vector<4x128xi1>, vector<4x128xf32>
    %75 = arith.addf %65, %74 : vector<4x128xf32>
    %c4_i32_19 = arith.constant 4 : i32
    %76 = vector.broadcast %c4_i32_19 : i32 to vector<1x128xi32>
    %77 = arith.xori %1, %76 : vector<1x128xi32>
    %c4_i32_20 = arith.constant 4 : i32
    %78 = tpu.dynamic_rotate %75 by %c4_i32_20 dim 1 : vector<4x128xf32>, i32 -> vector<4x128xf32>
    %c124_i32_21 = arith.constant 124 : i32
    %79 = tpu.dynamic_rotate %75 by %c124_i32_21 dim 1 : vector<4x128xf32>, i32 -> vector<4x128xf32>
    %c4_i32_22 = arith.constant 4 : i32
    %80 = tpu.dynamic_rotate %1 by %c4_i32_22 dim 1 : vector<1x128xi32>, i32 -> vector<1x128xi32>
    %81 = arith.cmpi eq, %80, %77 : vector<1x128xi32>
    %82 = vector.shape_cast %81 : vector<1x128xi1> to vector<1x128xi1>
    %83 = vector.broadcast %82 : vector<1x128xi1> to vector<4x128xi1>
    %84 = arith.select %83, %78, %79 : vector<4x128xi1>, vector<4x128xf32>
    %85 = arith.addf %75, %84 : vector<4x128xf32>
    %c2_i32_23 = arith.constant 2 : i32
    %86 = vector.broadcast %c2_i32_23 : i32 to vector<1x128xi32>
    %87 = arith.xori %1, %86 : vector<1x128xi32>
    %c2_i32_24 = arith.constant 2 : i32
    %88 = tpu.dynamic_rotate %85 by %c2_i32_24 dim 1 : vector<4x128xf32>, i32 -> vector<4x128xf32>
    %c126_i32_25 = arith.constant 126 : i32
    %89 = tpu.dynamic_rotate %85 by %c126_i32_25 dim 1 : vector<4x128xf32>, i32 -> vector<4x128xf32>
    %c2_i32_26 = arith.constant 2 : i32
    %90 = tpu.dynamic_rotate %1 by %c2_i32_26 dim 1 : vector<1x128xi32>, i32 -> vector<1x128xi32>
    %91 = arith.cmpi eq, %90, %87 : vector<1x128xi32>
    %92 = vector.shape_cast %91 : vector<1x128xi1> to vector<1x128xi1>
    %93 = vector.broadcast %92 : vector<1x128xi1> to vector<4x128xi1>
    %94 = arith.select %93, %88, %89 : vector<4x128xi1>, vector<4x128xf32>
    %95 = arith.addf %85, %94 : vector<4x128xf32>
    %c1_i32_27 = arith.constant 1 : i32
    %96 = vector.broadcast %c1_i32_27 : i32 to vector<1x128xi32>
    %97 = arith.xori %1, %96 : vector<1x128xi32>
    %c1_i32_28 = arith.constant 1 : i32
    %98 = tpu.dynamic_rotate %95 by %c1_i32_28 dim 1 : vector<4x128xf32>, i32 -> vector<4x128xf32>
    %c127_i32_29 = arith.constant 127 : i32
    %99 = tpu.dynamic_rotate %95 by %c127_i32_29 dim 1 : vector<4x128xf32>, i32 -> vector<4x128xf32>
    %c1_i32_30 = arith.constant 1 : i32
    %100 = tpu.dynamic_rotate %1 by %c1_i32_30 dim 1 : vector<1x128xi32>, i32 -> vector<1x128xi32>
    %101 = arith.cmpi eq, %100, %97 : vector<1x128xi32>
    %102 = vector.shape_cast %101 : vector<1x128xi1> to vector<1x128xi1>
    %103 = vector.broadcast %102 : vector<1x128xi1> to vector<4x128xi1>
    %104 = arith.select %103, %98, %99 : vector<4x128xi1>, vector<4x128xf32>
    %105 = arith.addf %95, %104 : vector<4x128xf32>
    %cst_31 = arith.constant 0.0322580636 : f32
    %106 = vector.broadcast %cst_31 : f32 to vector<4x128xf32>
    %107 = arith.mulf %105, %106 : vector<4x128xf32>
    %108 = math.sqrt %107 : vector<4x128xf32>
    %cst_32 = arith.constant 9.99999997E-7 : f32
    %109 = vector.broadcast %cst_32 : f32 to vector<4x128xf32>
    %110 = arith.addf %108, %109 : vector<4x128xf32>
    %111 = tpu.reciprocal %110 : vector<4x128xf32> -> vector<4x128xf32>
    %c0_33 = arith.constant 0 : index
    %c0_34 = arith.constant 0 : index
    %112 = vector.load %arg2[%c0_33, %c0_34] : memref<1x128xf32, #tpu.memory_space<vmem>>, vector<1x128xf32>
    %113 = vector.broadcast %112 : vector<1x128xf32> to vector<4x128xf32>
    %114 = arith.mulf %113, %54 : vector<4x128xf32>
    %115 = arith.mulf %114, %111 : vector<4x128xf32>
    %c0_35 = arith.constant 0 : index
    %c0_36 = arith.constant 0 : index
    %116 = vector.load %arg3[%c0_35, %c0_36] : memref<1x128xf32, #tpu.memory_space<vmem>>, vector<1x128xf32>
    %117 = vector.broadcast %116 : vector<1x128xf32> to vector<4x128xf32>
    %118 = arith.addf %115, %117 : vector<4x128xf32>
    %c0_37 = arith.constant 0 : index
    %c0_38 = arith.constant 0 : index
    %119 = vector.load %arg4[%c0_37, %c0_38] : memref<4x128xf32, #tpu.memory_space<vmem>>, vector<4x128xf32>
    tpu.vector_store %arg4[%c0_37, %c0_38], %118 {strides = array<i32>} : memref<4x128xf32, #tpu.memory_space<vmem>>, vector<4x128xf32>,
    return
  }
  func.func @transform_0(%arg0: i32) -> (i32, i32) {
    %c0_i32 = arith.constant 0 : i32
    %c0_i32_0 = arith.constant 0 : i32
    return %arg0, %c0_i32 : i32, i32
  }
  func.func @transform_1(%arg0: i32) -> (i32, i32) {
    %c0_i32 = arith.constant 0 : i32
    %c0_i32_0 = arith.constant 0 : i32
    %c0_i32_1 = arith.constant 0 : i32
    return %c0_i32, %c0_i32_0 : i32, i32
  }
  func.func @transform_2(%arg0: i32) -> (i32, i32) {
    %c0_i32 = arith.constant 0 : i32
    %c0_i32_0 = arith.constant 0 : i32
    %c0_i32_1 = arith.constant 0 : i32
    return %c0_i32, %c0_i32_0 : i32, i32
  }
  func.func @transform_3(%arg0: i32) -> (i32, i32) {
    %c0_i32 = arith.constant 0 : i32
    %c0_i32_0 = arith.constant 0 : i32
    return %arg0, %c0_i32 : i32, i32
  }
}

</mosaic_0001>

<bundles_post_ra>
// kernel: tpu_custom_call.1
= control target key start
LH: loop header
LB: loop body
LE: loop exit
PB: predicated region body
PF: predicated region fallthrough
CT: control target
= control target key end

     0   :  { %8 = vsyncpa [#allocation3], 0  ;;  %s429_s0 = inlined_call_operand.hbm [shape: f32[4,128], index: 0, kind: input, shape index: {}]   ;;  %s430_s1 = inlined_call_operand.hbm [shape: f32[1,128], index: 1, kind: input, shape index: {}]   ;;  %s431_s2 = inlined_call_operand.vmem [shape: f32[1,128], index: 2, kind: input, shape index: {}]   ;;  %s432_s3 = inlined_call_operand.hbm [shape: f32[4,128], index: 3, kind: output, shape index: {}]  }
   0x1   :  { %9 = vsyncpa [#allocation6], 0 }
   0x2   :  { %10 = vsyncpa [#allocation4], 0  ;;  %s16_s14 = sshll.u32 %s429_s0, 4  ;;  %s300_s15 = smov [#allocation2]   ;;  %s17_s14 = int_to_ptr.hbm [resolvable:$true] %s16_s14 }
   0x3   :  { %s18_s16 = sshll.u32 %s300_s15, 4  ;;  %s27_s19 = sshll.u32 %s430_s1, 4  ;;  %s19_s16 = int_to_ptr.vmem [resolvable:$true] %s18_s16  ;;  %s28_s19 = int_to_ptr.hbm [resolvable:$true] %s27_s19 }
   0x4   :  { %21 = dma.hbm_to_vmem [thread:$0]  %s17_s14, 64, %s19_s16, [#allocation3]  }
   0x5   :  { %s301_s20 = smov [#allocation5]  }
   0x6   :  { %s29_s21 = sshll.u32 %s301_s20, 4  ;;  %s30_s21 = int_to_ptr.vmem [resolvable:$true] %s29_s21 }
   0x7   :  { %32 = dma.hbm_to_vmem [thread:$0]  %s28_s19, 16, %s30_s21, [#allocation6]  }
   0x8   :  { %294 = dma.done.wait [#allocation3], 64  }
   0x9   :  { %295 = vsyncadd [#allocation3], 4294967232  ;;  %v44_v0 = vlaneseq }
   0xa   :  { %296 = dma.done.wait [#allocation6], 16  }
   0xb   :  { %297 = vsyncadd [#allocation6], 4294967280  ;;  %v340_v1 = vand.u32 127, %v44_v0  ;;  %s302_s0 = smov 16   ;;  %v344_v2 = vld [vmem:[#allocation2] sm:$0xf] }
   0xc   :  { %s303_s1 = smov 112   ;;  %s304_s22 = smov 8   ;;  %v306_v5 = vmov 0  }
   0xd   :  { %51 = vrot.lane.b32.xlu0 %v340_v1, %s302_s0  ;;  %49 = vrot.lane.b32.xlu1 %v344_v2, %s303_s1  ;;  %s305_s23 = smov 4   ;;  %v46_v3 = vxor.u32 16, %v340_v1  ;;  %s307_s24 = smov 120   ;;  %v59_v13 = vxor.u32 8, %v340_v1  ;;  %v72_v22 = vxor.u32 4, %v340_v1  ;;  %v85_v31 = vxor.u32 2, %v340_v1 }
   0xe   :  { %s308_s25 = smov 2   ;;  %s309_s26 = smov 124   ;;  %v98_v40 = vxor.u32 1, %v340_v1 }
   0xf   :  { %s310_s27 = smov 1   ;;  %s311_s28 = smov 126  }
  0x10   :  { %s312_s29 = smov 127   ;;  %s313_s5 = smov [#allocation7]  }
  0x11   :  { %s189_s6 = sshll.u32 %s313_s5, 4  ;;  %s191_s9 = sshll.u32 %s432_s3, 4  ;;  %s190_s6 = int_to_ptr.vmem [resolvable:$true] %s189_s6  ;;  %s192_s9 = int_to_ptr.hbm [resolvable:$true] %s191_s9 }
  0x15   :  { %47 = vrot.lane.b32.xlu0 %v344_v2, %s302_s0  ;;  %64 = vrot.lane.b32.xlu1 %v340_v1, %s304_s22 }
  0x1d   :  { %77 = vrot.lane.b32.xlu0 %v340_v1, %s305_s23 }
  0x25   :  { %90 = vrot.lane.b32.xlu0 %v340_v1, %s308_s25 }
  0x2d   :  { %103 = vrot.lane.b32.xlu0 %v340_v1, %s310_s27 }
  0x7f   :  { %v52_v4 = vpop.permute.xlu0 %51  ;;  %v50_v8 = vpop.permute.xlu1 %49 }
  0x80   :  { %vm53_vm0 = vcmp.eq.s32.totalorder %v52_v4, %v46_v3 }
  0x81   :  { %v54_v6 = vsel %vm53_vm0, 1, %v306_v5 }
  0x82   :  { %v55_v7 = vperm.slane %v54_v6, 0 }
  0x84   :  { %vm355_vm1 = vcmp.eq.s32.totalorder %v55_v7, 1 }
  0x87   :  { %v48_v10 = vpop.permute.xlu0 %47  ;;  %v65_v14 = vpop.permute.xlu1 %64 }
  0x88   :  { %v57_v11 = vsel %vm355_vm1, %v48_v10, %v50_v8  ;;  %vm66_vm2 = vcmp.eq.s32.totalorder %v65_v14, %v59_v13 }
  0x89   :  { %v58_v12 = vadd.f32 %v57_v11, %v344_v2  ;;  %v67_v15 = vsel %vm66_vm2, 1, %v306_v5 }
  0x8a   :  { %v68_v17 = vperm.slane %v67_v15, 0 }
  0x8b   :  { %60 = vrot.lane.b32.xlu2 %v58_v12, %s304_s22 }
  0x8c   :  { %vm367_vm3 = vcmp.eq.s32.totalorder %v68_v17, 1 }
  0x8f   :  { %v78_v23 = vpop.permute.xlu0 %77 }
  0x90   :  { %vm79_vm4 = vcmp.eq.s32.totalorder %v78_v23, %v72_v22 }
  0x91   :  { %v80_v24 = vsel %vm79_vm4, 1, %v306_v5 }
  0x92   :  { %v81_v25 = vperm.slane %v80_v24, 0  ;;  %v216_v24 = vld [vmem:[#allocation5] ss:$0 sm:$0xff] }
  0x93   :  { %62 = vrot.lane.b32.xlu2 %v58_v12, %s307_s24 }
  0x94   :  { %vm378_vm5 = vcmp.eq.s32.totalorder %v81_v25, 1 }
  0x97   :  { %v91_v32 = vpop.permute.xlu0 %90 }
  0x98   :  { %vm92_vm6 = vcmp.eq.s32.totalorder %v91_v32, %v85_v31  ;;  %v217_v31 = vld [vmem:[%s431_s2] ss:$0 sm:$0xff] }
  0x99   :  { %v93_v33 = vsel %vm92_vm6, 1, %v306_v5 }
  0x9a   :  { %v94_v34 = vperm.slane %v93_v33, 0 }
  0x9c   :  { %vm387_vm7 = vcmp.eq.s32.totalorder %v94_v34, 1 }
  0x9f   :  { %v104_v41 = vpop.permute.xlu0 %103 }
  0xa0   :  { %vm105_vm8 = vcmp.eq.s32.totalorder %v104_v41, %v98_v40 }
  0xa1   :  { %v106_v42 = vsel %vm105_vm8, 1, %v306_v5 }
  0xa2   :  { %v107_v43 = vperm.slane %v106_v42, 0 }
  0xa4   :  { %vm396_vm9 = vcmp.eq.s32.totalorder %v107_v43, 1 }
  0xe5   :  { %v61_v16 = vpop.permute.xlu2 %60 }
  0xed   :  { %v63_v19 = vpop.permute.xlu2 %62 }
  0xee   :  { %v70_v20 = vsel %vm367_vm3, %v61_v16, %v63_v19 }
  0xef   :  { %v71_v21 = vadd.f32 %v70_v20, %v58_v12 }
  0xf1   :  { %75 = vrot.lane.b32.xlu2 %v71_v21, %s309_s26  ;;  %73 = vrot.lane.b32.xlu1 %v71_v21, %s305_s23 }
 0x14b   :  { %v76_v27 = vpop.permute.xlu2 %75 }
 0x163   :  { %v74_v28 = vpop.permute.xlu1 %73 }
 0x164   :  { %v83_v29 = vsel %vm378_vm5, %v74_v28, %v76_v27 }
 0x165   :  { %v84_v30 = vadd.f32 %v83_v29, %v71_v21 }
 0x167   :  { %88 = vrot.lane.b32.xlu2 %v84_v30, %s311_s28  ;;  %86 = vrot.lane.b32.xlu1 %v84_v30, %s308_s25 }
 0x1c1   :  { %v89_v36 = vpop.permute.xlu2 %88 }
 0x1d9   :  { %v87_v37 = vpop.permute.xlu1 %86 }
 0x1da   :  { %v96_v38 = vsel %vm387_vm7, %v87_v37, %v89_v36 }
 0x1db   :  { %v97_v39 = vadd.f32 %v96_v38, %v84_v30 }
 0x1dd   :  { %101 = vrot.lane.b32.xlu2 %v97_v39, %s312_s29  ;;  %99 = vrot.lane.b32.xlu1 %v97_v39, %s310_s27 }
 0x237   :  { %v102_v45 = vpop.permute.xlu2 %101 }
 0x24f   :  { %v100_v46 = vpop.permute.xlu1 %99 }
 0x250   :  { %v109_v47 = vsel %vm396_vm9, %v100_v46, %v102_v45 }
 0x251   :  { %v110_v48 = vadd.f32 %v109_v47, %v97_v39 }
 0x253   :  { %v111_v49 = vmul.f32 0.03125, %v110_v48 }
 0x255   :  { %v112_v50 = vsub.f32 %v344_v2, %v111_v49 }
 0x257   :  { %v113_v51 = vmul.f32 %v112_v50, %v112_v50  ;;  %v176_v29 = vmul.f32 %v216_v24, %v112_v50 }
 0x259   :  { %116 = vrot.lane.b32.xlu1 %v113_v51, %s303_s1  ;;  %114 = vrot.lane.b32.xlu0 %v113_v51, %s302_s0 }
 0x2cb   :  { %v117_v52 = vpop.permute.xlu1 %116  ;;  %v115_v53 = vpop.permute.xlu0 %114 }
 0x2cc   :  { %v118_v54 = vsel %vm355_vm1, %v115_v53, %v117_v52 }
 0x2cd   :  { %v119_v55 = vadd.f32 %v118_v54, %v113_v51 }
 0x2cf   :  { %122 = vrot.lane.b32.xlu0 %v119_v55, %s307_s24  ;;  %120 = vrot.lane.b32.xlu2 %v119_v55, %s304_s22 }
 0x329   :  { %v121_v56 = vpop.permute.xlu2 %120 }
 0x341   :  { %v123_v57 = vpop.permute.xlu0 %122 }
 0x342   :  { %v124_v58 = vsel %vm367_vm3, %v121_v56, %v123_v57 }
 0x343   :  { %v125_v59 = vadd.f32 %v124_v58, %v119_v55 }
 0x345   :  { %128 = vrot.lane.b32.xlu2 %v125_v59, %s309_s26  ;;  %126 = vrot.lane.b32.xlu1 %v125_v59, %s305_s23 }
 0x39f   :  { %v129_v60 = vpop.permute.xlu2 %128 }
 0x3b7   :  { %v127_v61 = vpop.permute.xlu1 %126 }
 0x3b8   :  { %v130_v62 = vsel %vm378_vm5, %v127_v61, %v129_v60 }
 0x3b9   :  { %v131_v63 = vadd.f32 %v130_v62, %v125_v59 }
 0x3bb   :  { %134 = vrot.lane.b32.xlu1 %v131_v63, %s311_s28  ;;  %132 = vrot.lane.b32.xlu0 %v131_v63, %s308_s25 }
 0x42d   :  { %v135_v0 = vpop.permute.xlu1 %134  ;;  %v133_v1 = vpop.permute.xlu0 %132 }
 0x42e   :  { %v136_v2 = vsel %vm387_vm7, %v133_v1, %v135_v0 }
 0x42f   :  { %v137_v3 = vadd.f32 %v136_v2, %v131_v63 }
 0x431   :  { %140 = vrot.lane.b32.xlu0 %v137_v3, %s312_s29  ;;  %138 = vrot.lane.b32.xlu2 %v137_v3, %s310_s27 }
 0x48b   :  { %v139_v4 = vpop.permute.xlu2 %138 }
 0x4a3   :  { %v141_v5 = vpop.permute.xlu0 %140 }
 0x4a4   :  { %v142_v6 = vsel %vm396_vm9, %v139_v4, %v141_v5 }
 0x4a5   :  { %v143_v7 = vadd.f32 %v142_v6, %v137_v3 }
 0x4a7   :  { %v144_v8 = vmul.f32 0.032258064, %v143_v7 }
 0x4a9   :  { %218 = vrsqrt.f32 %v144_v8  ;;  %vm152_vm10 = vcmp.eq.f32.partialorder %v144_v8, inf  ;;  %v155_v16 = vand.u32 2147483648, %v144_v8  ;;  %vm154_vm11 = vcmp.eq.f32.partialorder %v144_v8, 0.0 }
 0x4af   :  { %v219_v9 = vpop.eup %218 }
 0x4b0   :  { %v146_v10 = vmul.f32 %v219_v9, %v144_v8 }
 0x4b2   :  { %v147_v11 = vmul.f32 %v219_v9, %v146_v10 }
 0x4b4   :  { %v148_v12 = vmul.f32 0.5, %v147_v11 }
 0x4b6   :  { %v149_v13 = vsub.f32 1.5, %v148_v12 }
 0x4b8   :  { %v150_v14 = vmul.f32 %v219_v9, %v149_v13 }
 0x4ba   :  { %v151_v15 = vmul.f32 %v150_v14, %v144_v8 }
 0x4bc   :  { %v153_v17 = vsel %vm152_vm10, %v144_v8, %v151_v15 }
 0x4bd   :  { %v156_v18 = vsel %vm154_vm11, %v155_v16, %v153_v17 }
 0x4be   :  { %v157_v19 = vadd.f32 1e-06, %v156_v18 }
 0x4c0   :  { %220 = vrcp.f32 %v157_v19  ;;  %v169_v23 = vand.u32 2147483648, %v157_v19  ;;  %v167_v26 = vand.u32 2147483647, %v157_v19  ;;  %vm163_vm13 = vweird.f32 %v157_v19 }
 0x4c2   :  { %v170_v28 = vor.u32 1.1754944e-38, %v169_v23  ;;  %vm168_vm15 = vcmp.eq.f32.partialorder %v167_v26, 8.507059e+37 }
 0x4c6   :  { %v221_v20 = vpop.eup %220 }
 0x4c7   :  { %v159_v21 = vmul.f32 %v221_v20, %v157_v19  ;;  %vm164_vm12 = vweird.f32 %v221_v20 }
 0x4c8   :  { %vm165_vm14 = vmor %vm163_vm13, %vm164_vm12 }
 0x4c9   :  { %v160_v22 = vsub.f32 1.0, %v159_v21 }
 0x4cb   :  { %v161_v25 = vmul.f32 %v221_v20, %v160_v22 }
 0x4cd   :  { %v162_v27 = vadd.f32 %v221_v20, %v161_v25 }
 0x4cf   :  { %v166_v30 = vsel %vm165_vm14, %v221_v20, %v162_v27 }
 0x4d0   :  { %v171_v32 = vsel %vm168_vm15, %v170_v28, %v166_v30 }
 0x4d1   :  { %v177_v33 = vmul.f32 %v176_v29, %v171_v32 }
 0x4d3   :  { %v182_v34 = vadd.f32 %v217_v31, %v177_v33 }
 0x4d5   :  { %183 = vst [vmem:[#allocation7] sm:$0xf] %v182_v34 }
 0x4d6   :  { %194 = dma.vmem_to_hbm [thread:$0]  %s190_s6, 64, %s192_s9, [#allocation4]  }
 0x4d7   :  { %298 = dma.done.wait [#allocation4], 64  }
 0x4d8   :  { %299 = vsyncadd [#allocation4], 4294967232 }
 0x4d9   :  { %199 = vsyncpa [#allocation3], 1 }
 0x4da   :  { %200 = vsyncpa [#allocation6], 1 }
 0x4db   :  { %201 = vsyncpa [#allocation4], 1 }

</bundles_post_ra>
